<compile_context>
chip_gen: v6e
topology: v6e:2x2x1
jax: 0.10.0
libtpu: 0.0.40
codegen_flags: <defaults>
</compile_context>

<pallas_src>
import functools

import jax
import jax.numpy as jnp
from jax.experimental import pallas as pl
from jax.experimental.pallas import tpu as pltpu


_INV_SQRT2 = 0.7071067811865476


def _ffn_kernel(x_ref, w1_ref, b1_ref, w2_ref, b2_ref, o_ref, acc_ref):
    # x_ref : (tm, dim)  bf16   input row tile
    # w1_ref: (dim, tf)  bf16   fc1 weight chunk
    # b1_ref: (1, tf)    f32    fc1 bias chunk
    # w2_ref: (tf, dim)  bf16   fc2 weight chunk
    # b2_ref: (1, dim)   f32    fc2 bias
    # o_ref : (tm, dim)         output tile (input dtype)
    # acc_ref:(tm, dim)  f32    VMEM accumulator (resident across ff chunks)
    j = pl.program_id(1)

    @pl.when(j == 0)
    def _init():
        acc_ref[...] = jnp.zeros_like(acc_ref)

    # fc1 chunk on the MXU: bf16 x bf16 -> f32.
    h = jnp.dot(x_ref[...], w1_ref[...], preferred_element_type=jnp.float32)
    h = h + b1_ref[...]

    # Exact erf GELU in f32 (matches torch.nn.functional.gelu default).
    # TODO(synk): switch to tanh-approx GELU (EUP path) if the VALU slot
    #             saturates before the MXU in profiling.
    h = 0.5 * h * (1.0 + jax.lax.erf(h * _INV_SQRT2))

    # Partial fc2: bf16 inputs, f32 accumulation into the scratch.
    acc_ref[...] += jnp.dot(h.astype(jnp.bfloat16), w2_ref[...],
                            preferred_element_type=jnp.float32)

    @pl.when(j == pl.num_programs(1) - 1)
    def _finalize():
        o_ref[...] = (acc_ref[...] + b2_ref[...]).astype(o_ref.dtype)


def _round_up(x, m):
    return (x + m - 1) // m * m


@functools.partial(jax.jit, static_argnames=("tm", "tf"))
def position_wise_feed_forward(x, w1, b1, w2, b2, *, tm=512, tf=1024):
    """x: (batch, seq, dim) float32; w1: (dim, ff_dim); w2: (ff_dim, dim)."""
    batch, seq, dim = x.shape
    ff_dim = w1.shape[1]
    m = batch * seq

    # --- choose tiles & pad so they divide evenly ------------------------
    tm_eff = min(tm, _round_up(m, 128))           # 128-aligned row tile
    m_pad = _round_up(m, tm_eff)

    ff_rounded = _round_up(ff_dim, 128)
    tf_eff = min(tf, ff_rounded)                  # 128-aligned ff chunk
    ff_pad = _round_up(ff_rounded, tf_eff)

    x2d = x.reshape(m, dim)
    if m_pad != m:
        x2d = jnp.pad(x2d, ((0, m_pad - m), (0, 0)))
    if ff_pad != ff_dim:
        # zero padding is exact: gelu(0) = 0 and padded W2 rows are zero.
        w1 = jnp.pad(w1, ((0, 0), (0, ff_pad - ff_dim)))
        b1 = jnp.pad(b1, ((0, ff_pad - ff_dim),))
        w2 = jnp.pad(w2, ((0, ff_pad - ff_dim), (0, 0)))

    # bf16 MXU operands, f32 accumulation.
    x_bf = x2d.astype(jnp.bfloat16)
    w1_bf = w1.astype(jnp.bfloat16)
    w2_bf = w2.astype(jnp.bfloat16)
    b1_2d = b1.reshape(1, ff_pad).astype(jnp.float32)
    b2_2d = b2.reshape(1, dim).astype(jnp.float32)

    grid = (m_pad // tm_eff, ff_pad // tf_eff)

    out2d = pl.pallas_call(
        _ffn_kernel,
        out_shape=jax.ShapeDtypeStruct((m_pad, dim), x.dtype),
        grid_spec=pltpu.PrefetchScalarGridSpec(
            num_scalar_prefetch=0,
            grid=grid,
            in_specs=[
                pl.BlockSpec((tm_eff, dim), lambda i, j: (i, 0)),    # x rows
                pl.BlockSpec((dim, tf_eff), lambda i, j: (0, j)),    # W1 chunk
                pl.BlockSpec((1, tf_eff), lambda i, j: (0, j)),      # b1 chunk
                pl.BlockSpec((tf_eff, dim), lambda i, j: (j, 0)),    # W2 chunk
                pl.BlockSpec((1, dim), lambda i, j: (0, 0)),         # b2
            ],
            out_specs=pl.BlockSpec((tm_eff, dim), lambda i, j: (i, 0)),
            scratch_shapes=[pltpu.VMEM((tm_eff, dim), jnp.float32)],
        ),
        compiler_params=pltpu.CompilerParams(
            dimension_semantics=("parallel", "arbitrary"),
            vmem_limit_bytes=48 * 1024 * 1024,
        ),
    )(x_bf, w1_bf, b1_2d, w2_bf, b2_2d)

    return out2d[:m].reshape(batch, seq, dim)


def _init_linear_params(key, in_features, out_features):
    """Deterministic init mimicking torch.nn.Linear (uniform +-1/sqrt(fan_in)).

    Returns weight already transposed: (in_features, out_features)."""
    kw, kb = jax.random.split(key)
    bound = 1.0 / jnp.sqrt(jnp.float32(in_features))
    w = jax.random.uniform(kw, (in_features, out_features), jnp.float32,
                           minval=-bound, maxval=bound)
    b = jax.random.uniform(kb, (out_features,), jnp.float32,
                           minval=-bound, maxval=bound)
    return w, b


if __name__ == "__main__":
    batch, seq, dim, ff_dim = 2, 8, 32, 64

    key = jax.random.PRNGKey(0)
    kx, k1, k2 = jax.random.split(key, 3)

    x = jax.random.normal(kx, (batch, seq, dim), jnp.float32)
    w1, b1 = _init_linear_params(k1, dim, ff_dim)   # fc1: dim -> ff_dim
    w2, b2 = _init_linear_params(k2, ff_dim, dim)   # fc2: ff_dim -> dim

    out = position_wise_feed_forward(x, w1, b1, w2, b2)
    out = jax.block_until_ready(out)

    # Reference in plain JAX with the same bf16-operand / f32-accumulate
    # precision as the kernel (erf GELU in f32).
    xb = x.reshape(-1, dim).astype(jnp.bfloat16)
    h_ref = jnp.dot(xb, w1.astype(jnp.bfloat16),
                    preferred_element_type=jnp.float32) + b1
    h_ref = 0.5 * h_ref * (1.0 + jax.lax.erf(h_ref * _INV_SQRT2))
    y_ref = jnp.dot(h_ref.astype(jnp.bfloat16), w2.astype(jnp.bfloat16),
                    preferred_element_type=jnp.float32) + b2
    y_ref = y_ref.reshape(batch, seq, dim)
    assert jnp.allclose(out, y_ref, atol=2e-3, rtol=2e-3), (
        float(jnp.max(jnp.abs(out - y_ref))))

    print("KERNEL_OK")
</pallas_src>

<mosaic_0001>
module attributes {stable_mosaic.version = 11 : i64} {
  func.func @_ffn_kernel(%arg0: i32, %arg1: i32, %arg2: memref<128x32xbf16, #tpu.memory_space<vmem>>, %arg3: memref<32x128xbf16, #tpu.memory_space<vmem>>, %arg4: memref<1x128xf32, #tpu.memory_space<vmem>>, %arg5: memref<128x32xbf16, #tpu.memory_space<vmem>>, %arg6: memref<1x32xf32, #tpu.memory_space<vmem>>, %arg7: memref<128x32xf32, #tpu.memory_space<vmem>>, %arg8: memref<128x32xf32, #tpu.memory_space<vmem>>) attributes {dimension_semantics = [#tpu.dimension_semantics<parallel>, #tpu.dimension_semantics<arbitrary>], iteration_bounds = array<i64: 1, 1>, scalar_prefetch = 0 : i64, scratch_operands = 1 : i64, tpu.core_type = #tpu.core_type<tc>, window_params = [{transform_indices = @transform_0, window_bounds = array<i64: 128, 32>}, {transform_indices = @transform_1, window_bounds = array<i64: 32, 128>}, {transform_indices = @transform_2, window_bounds = array<i64: 1, 128>}, {transform_indices = @transform_3, window_bounds = array<i64: 128, 32>}, {pipeline_mode = #tpu.pipeline_mode<synchronous>, transform_indices = @transform_4, window_bounds = array<i64: 1, 32>}, {transform_indices = @transform_5, window_bounds = array<i64: 128, 32>}]} {
    %c0_i32 = arith.constant 0 : i32
    %0 = arith.cmpi eq, %arg1, %c0_i32 : i32
    %1 = arith.extui %0 : i1 to i32
    %c0_i32_0 = arith.constant 0 : i32
    %2 = arith.cmpi ne, %1, %c0_i32_0 : i32
    scf.if %2 {
      %cst_18 = arith.constant 0.000000e+00 : f32
      %26 = vector.broadcast %cst_18 : f32 to vector<128x32xf32>
      %c0_19 = arith.constant 0 : index
      %c0_20 = arith.constant 0 : index
      %27 = vector.load %arg8[%c0_19, %c0_20] : memref<128x32xf32, #tpu.memory_space<vmem>>, vector<128x32xf32>
      tpu.vector_store %arg8[%c0_19, %c0_20], %26 {strides = array<i32>} : memref<128x32xf32, #tpu.memory_space<vmem>>, vector<128x32xf32>,
    } else {
    }
    %c0 = arith.constant 0 : index
    %c0_1 = arith.constant 0 : index
    %3 = vector.load %arg2[%c0, %c0_1] : memref<128x32xbf16, #tpu.memory_space<vmem>>, vector<128x32xbf16>
    %c0_2 = arith.constant 0 : index
    %c0_3 = arith.constant 0 : index
    %4 = vector.load %arg3[%c0_2, %c0_3] : memref<32x128xbf16, #tpu.memory_space<vmem>>, vector<32x128xbf16>
    %cst = arith.constant dense<0.000000e+00> : vector<128x128xf32>
    %5 = tpu.matmul %3, %4, %cst {dimension_numbers = #tpu.dot_dimension_numbers<[1], [0], [0], [1], [0, 0, 1, 1], [], []>} : vector<128x32xbf16>, vector<32x128xbf16>, vector<128x128xf32> -> vector<128x128xf32>
    %c0_4 = arith.constant 0 : index
    %c0_5 = arith.constant 0 : index
    %6 = vector.load %arg4[%c0_4, %c0_5] : memref<1x128xf32, #tpu.memory_space<vmem>>, vector<1x128xf32>
    %7 = vector.broadcast %6 : vector<1x128xf32> to vector<128x128xf32>
    %8 = arith.addf %5, %7 : vector<128x128xf32>
    %cst_6 = arith.constant 5.000000e-01 : f32
    %9 = vector.broadcast %cst_6 : f32 to vector<128x128xf32>
    %10 = arith.mulf %9, %8 : vector<128x128xf32>
    %cst_7 = arith.constant 0.707106769 : f32
    %11 = vector.broadcast %cst_7 : f32 to vector<128x128xf32>
    %12 = arith.mulf %8, %11 : vector<128x128xf32>
    %13 = math.erf %12 : vector<128x128xf32>
    %cst_8 = arith.constant 1.000000e+00 : f32
    %14 = vector.broadcast %cst_8 : f32 to vector<128x128xf32>
    %15 = arith.addf %14, %13 : vector<128x128xf32>
    %16 = arith.mulf %10, %15 : vector<128x128xf32>
    %c0_9 = arith.constant 0 : index
    %c0_10 = arith.constant 0 : index
    %17 = vector.load %arg8[%c0_9, %c0_10] : memref<128x32xf32, #tpu.memory_space<vmem>>, vector<128x32xf32>
    %18 = arith.truncf %16 : vector<128x128xf32> to vector<128x128xbf16>
    %c0_11 = arith.constant 0 : index
    %c0_12 = arith.constant 0 : index
    %19 = vector.load %arg5[%c0_11, %c0_12] : memref<128x32xbf16, #tpu.memory_space<vmem>>, vector<128x32xbf16>
    %cst_13 = arith.constant dense<0.000000e+00> : vector<128x32xf32>
    %20 = tpu.matmul %18, %19, %cst_13 {dimension_numbers = #tpu.dot_dimension_numbers<[1], [0], [0], [1], [0, 0, 1, 1], [], []>} : vector<128x128xbf16>, vector<128x32xbf16>, vector<128x32xf32> -> vector<128x32xf32>
    %21 = arith.addf %17, %20 : vector<128x32xf32>
    %c0_14 = arith.constant 0 : index
    %c0_15 = arith.constant 0 : index
    %22 = vector.load %arg8[%c0_14, %c0_15] : memref<128x32xf32, #tpu.memory_space<vmem>>, vector<128x32xf32>
    tpu.vector_store %arg8[%c0_14, %c0_15], %21 {strides = array<i32>} : memref<128x32xf32, #tpu.memory_space<vmem>>, vector<128x32xf32>,
    %c0_i32_16 = arith.constant 0 : i32
    %23 = arith.cmpi eq, %arg1, %c0_i32_16 : i32
    %24 = arith.extui %23 : i1 to i32
    %c0_i32_17 = arith.constant 0 : i32
    %25 = arith.cmpi ne, %24, %c0_i32_17 : i32
    scf.if %25 {
      %c0_18 = arith.constant 0 : index
      %c0_19 = arith.constant 0 : index
      %26 = vector.load %arg8[%c0_18, %c0_19] : memref<128x32xf32, #tpu.memory_space<vmem>>, vector<128x32xf32>
      %c0_20 = arith.constant 0 : index
      %c0_21 = arith.constant 0 : index
      %27 = vector.load %arg6[%c0_20, %c0_21] : memref<1x32xf32, #tpu.memory_space<vmem>>, vector<1x32xf32>
      %28 = vector.broadcast %27 : vector<1x32xf32> to vector<128x32xf32>
      %29 = arith.addf %26, %28 : vector<128x32xf32>
      %c0_22 = arith.constant 0 : index
      %c0_23 = arith.constant 0 : index
      %30 = vector.load %arg7[%c0_22, %c0_23] : memref<128x32xf32, #tpu.memory_space<vmem>>, vector<128x32xf32>
      tpu.vector_store %arg7[%c0_22, %c0_23], %29 {strides = array<i32>} : memref<128x32xf32, #tpu.memory_space<vmem>>, vector<128x32xf32>,
    } else {
    }
    return
  }
  func.func @transform_0(%arg0: i32, %arg1: i32) -> (i32, i32) {
    %c0_i32 = arith.constant 0 : i32
    %c0_i32_0 = arith.constant 0 : i32
    return %arg0, %c0_i32 : i32, i32
  }
  func.func @transform_1(%arg0: i32, %arg1: i32) -> (i32, i32) {
    %c0_i32 = arith.constant 0 : i32
    %c0_i32_0 = arith.constant 0 : i32
    return %c0_i32, %arg1 : i32, i32
  }
  func.func @transform_2(%arg0: i32, %arg1: i32) -> (i32, i32) {
    %c0_i32 = arith.constant 0 : i32
    %c0_i32_0 = arith.constant 0 : i32
    return %c0_i32, %arg1 : i32, i32
  }
  func.func @transform_3(%arg0: i32, %arg1: i32) -> (i32, i32) {
    %c0_i32 = arith.constant 0 : i32
    %c0_i32_0 = arith.constant 0 : i32
    return %arg1, %c0_i32 : i32, i32
  }
  func.func @transform_4(%arg0: i32, %arg1: i32) -> (i32, i32) {
    %c0_i32 = arith.constant 0 : i32
    %c0_i32_0 = arith.constant 0 : i32
    %c0_i32_1 = arith.constant 0 : i32
    return %c0_i32, %c0_i32_0 : i32, i32
  }
  func.func @transform_5(%arg0: i32, %arg1: i32) -> (i32, i32) {
    %c0_i32 = arith.constant 0 : i32
    %c0_i32_0 = arith.constant 0 : i32
    return %arg0, %c0_i32 : i32, i32
  }
}

</mosaic_0001>

<bundles_post_ra>
// kernel: position_wise_feed_forward.1
= control target key start
LH: loop header
LB: loop body
LE: loop exit
PB: predicated region body
PF: predicated region fallthrough
CT: control target
= control target key end

     0   :  { %vm25_vm0 = vcmask 261120   ;;  %v775_v18 = vmov 0.0   ;;  %s1038_s1 = inlined_call_operand.vmem [shape: bf16[32,128], index: 1, kind: input, shape index: {}]   ;;  %s1039_s0 = inlined_call_operand.vmem [shape: bf16[128,32], index: 0, kind: input, shape index: {}]   ;;  %s1040_s3 = inlined_call_operand.vmem [shape: bf16[128,32], index: 3, kind: input, shape index: {}]   ;;  %s1041_s2 = inlined_call_operand.vmem [shape: f32[1,128], index: 2, kind: input, shape index: {}]   ;;  %s1042_s4 = inlined_call_operand.vmem [shape: f32[1,32], index: 4, kind: input, shape index: {}]   ;;  %s1043_s5 = inlined_call_operand.vmem [shape: f32[128,32], index: 5, kind: output, shape index: {}]  }
   0x1   :  { %v725_v0 = vld [vmem:[%s1038_s1 + $0x8] sm:$0xff]   ;;  %v726_v1 = vld [vmem:[%s1038_s1] sm:$0xff]   ;;  %v729_v4 = vld [vmem:[%s1039_s0 + $0x10] sm:$0xff]   ;;  %28 = vst.msk [vmem:[#allocation2 + $0x10] sm:$0xff] %vm25_vm0, %v775_v18 }
   0x2   :  { %656 = vmatprep.subr.bf16.mxu0 %v725_v0  ;;  %v727_v2 = vld [vmem:[%s1039_s0] sm:$0xff]   ;;  %v728_v3 = vld [vmem:[%s1039_s0 + $0x8] sm:$0xff]   ;;  %v730_v5 = vld [vmem:[%s1039_s0 + $0x18] sm:$0xff]   ;;  %26 = vst.msk [vmem:[#allocation2] sm:$0xff] %vm25_vm0, %v775_v18 }
   0x3   :  { %657 = vmatpush3.bf16.msra.mxu0 %v725_v0  ;;  %660 = vmatprep.mubr.msk.bf16.mxu0 %vm25_vm0, %v727_v2  ;;  %v731_v6 = vld [vmem:[%s1039_s0 + $0x20] sm:$0xff]   ;;  %v732_v7 = vld [vmem:[%s1039_s0 + $0x28] sm:$0xff]   ;;  %v733_v8 = vld [vmem:[%s1039_s0 + $0x30] sm:$0xff]   ;;  %27 = vst.msk [vmem:[#allocation2 + $0x8] sm:$0xff] %vm25_vm0, %v775_v18 }
   0x4   :  { %658 = vmatprep.subr.bf16.mxu0 %v726_v1  ;;  %v734_v9 = vld [vmem:[%s1039_s0 + $0x38] sm:$0xff]   ;;  %v736_v11 = vld [vmem:[%s1040_s3 + $0x30] sm:$0xff]   ;;  %v737_v12 = vld [vmem:[%s1040_s3 + $0x28] sm:$0xff]   ;;  %29 = vst.msk [vmem:[#allocation2 + $0x18] sm:$0xff] %vm25_vm0, %v775_v18 }
   0x5   :  { %v735_v10 = vld [vmem:[%s1040_s3 + $0x38] sm:$0xff]   ;;  %v738_v13 = vld [vmem:[%s1040_s3 + $0x20] sm:$0xff]   ;;  %v740_v15 = vld [vmem:[%s1040_s3 + $0x10] sm:$0xff]   ;;  %30 = vst.msk [vmem:[#allocation2 + $0x20] sm:$0xff] %vm25_vm0, %v775_v18 }
   0x6   :  { %708 = vmatprep.subr.bf16.mxu1 %v735_v10  ;;  %v739_v14 = vld [vmem:[%s1040_s3 + $0x18] sm:$0xff]   ;;  %v741_v16 = vld [vmem:[%s1040_s3 + $0x8] sm:$0xff]   ;;  %v742_v17 = vld [vmem:[%s1040_s3] sm:$0xff]   ;;  %31 = vst.msk [vmem:[#allocation2 + $0x28] sm:$0xff] %vm25_vm0, %v775_v18 }
   0x7   :  { %659 = vmatpush3.bf16.msra.mxu0 %v726_v1  ;;  %716 = vmatpush3.bf16.msra.mxu1 %v735_v10  ;;  %32 = vst.msk [vmem:[#allocation2 + $0x30] sm:$0xff] %vm25_vm0, %v775_v18  ;;  %33 = vst.msk [vmem:[#allocation2 + $0x38] sm:$0xff] %vm25_vm0, %v775_v18  ;;  %v887_v19 = vld [vmem:[%s1041_s2] ss:$0 sm:$0xff] }
   0x8   :  { %676 = vmatprep.subr.bf16.mxu0 %v735_v10  ;;  %709 = vmatprep.subr.bf16.mxu1 %v736_v11  ;;  %34 = vst.msk [vmem:[#allocation2 + $0x40] sm:$0xff] %vm25_vm0, %v775_v18  ;;  %35 = vst.msk [vmem:[#allocation2 + $0x48] sm:$0xff] %vm25_vm0, %v775_v18 }
   0x9   :  { %36 = vst.msk [vmem:[#allocation2 + $0x50] sm:$0xff] %vm25_vm0, %v775_v18  ;;  %37 = vst.msk [vmem:[#allocation2 + $0x58] sm:$0xff] %vm25_vm0, %v775_v18 }
   0xa   :  { %661 = vmatmul.mubr.msk.bf16.vlgmr.msra.gmra.mxu0 %vm25_vm0, %v728_v3  ;;  %38 = vst.msk [vmem:[#allocation2 + $0x60] sm:$0xff] %vm25_vm0, %v775_v18  ;;  %39 = vst.msk [vmem:[#allocation2 + $0x68] sm:$0xff] %vm25_vm0, %v775_v18 }
   0xb   :  { %664 = vmatprep.mubr.msk.bf16.mxu0 %vm25_vm0, %v729_v4  ;;  %677 = vmatpush3.bf16.msra.mxu0 %v735_v10  ;;  %40 = vst.msk [vmem:[#allocation2 + $0x70] sm:$0xff] %vm25_vm0, %v775_v18  ;;  %41 = vst.msk [vmem:[#allocation2 + $0x78] sm:$0xff] %vm25_vm0, %v775_v18 }
   0xc   :  { %678 = vmatprep.subr.bf16.mxu0 %v736_v11  ;;  %717 = vmatpush3.bf16.msra.mxu1 %v736_v11 }
   0xd   :  { %710 = vmatprep.subr.bf16.mxu1 %v737_v12 }
   0xf   :  { %679 = vmatpush3.bf16.msra.mxu0 %v736_v11 }
  0x10   :  { %680 = vmatprep.subr.bf16.mxu0 %v737_v12  ;;  %718 = vmatpush3.bf16.msra.mxu1 %v737_v12 }
  0x11   :  { %711 = vmatprep.subr.bf16.mxu1 %v738_v13 }
  0x12   :  { %665 = vmatmul.mubr.msk.bf16.gmra.mxu0 %vm25_vm0, %v730_v5 }
  0x13   :  { %668 = vmatprep.mubr.msk.bf16.mxu0 %vm25_vm0, %v731_v6  ;;  %681 = vmatpush3.bf16.msra.mxu0 %v737_v12 }
  0x14   :  { %682 = vmatprep.subr.bf16.mxu0 %v738_v13  ;;  %719 = vmatpush3.bf16.msra.mxu1 %v738_v13 }
  0x15   :  { %712 = vmatprep.subr.bf16.mxu1 %v739_v14 }
  0x17   :  { %683 = vmatpush3.bf16.msra.mxu0 %v738_v13 }
  0x18   :  { %684 = vmatprep.subr.bf16.mxu0 %v739_v14  ;;  %720 = vmatpush3.bf16.msra.mxu1 %v739_v14 }
  0x19   :  { %713 = vmatprep.subr.bf16.mxu1 %v740_v15 }
  0x1a   :  { %669 = vmatmul.mubr.msk.bf16.gmra.mxu0 %vm25_vm0, %v732_v7 }
  0x1b   :  { %672 = vmatprep.mubr.msk.bf16.mxu0 %vm25_vm0, %v733_v8  ;;  %685 = vmatpush3.bf16.msra.mxu0 %v739_v14 }
  0x1c   :  { %686 = vmatprep.subr.bf16.mxu0 %v740_v15  ;;  %721 = vmatpush3.bf16.msra.mxu1 %v740_v15 }
  0x1d   :  { %714 = vmatprep.subr.bf16.mxu1 %v741_v16 }
  0x1f   :  { %687 = vmatpush3.bf16.msra.mxu0 %v740_v15 }
  0x20   :  { %688 = vmatprep.subr.bf16.mxu0 %v741_v16  ;;  %722 = vmatpush3.bf16.msra.mxu1 %v741_v16 }
  0x21   :  { %715 = vmatprep.subr.bf16.mxu1 %v742_v17 }
  0x22   :  { %673 = vmatmul.mubr.msk.bf16.gmra.mxu0 %vm25_vm0, %v734_v9 }
  0x23   :  { %689 = vmatpush3.bf16.msra.mxu0 %v741_v16 }
  0x24   :  { %690 = vmatprep.subr.bf16.mxu0 %v742_v17  ;;  %723 = vmatpush3.bf16.msra.mxu1 %v742_v17 }
  0x27   :  { %691 = vmatpush3.bf16.msra.mxu0 %v742_v17 }
  0xca   :  { %v662_v20 = vpop.f32.mrf.mxu0 }
  0xcb   :  { %v189_v21 = vadd.f32 %v662_v20, %v887_v19 }
  0xcc   :  { %v180_v22 = vpop.f32.mrf.mxu0 }
  0xcd   :  { %v181_v23 = vadd.f32 %v887_v19, %v180_v22  ;;  %v261_v24 = vmul.f32 0.70710677, %v189_v21  ;;  %v245_v4 = vmul.f32 0.5, %v189_v21 }
  0xce   :  { %v663_v25 = vpop.f32.mrf.mxu0 }
  0xcf   :  { %v259_v26 = vmul.f32 0.70710677, %v181_v23  ;;  %v192_v27 = vadd.f32 %v663_v25, %v887_v19  ;;  %v243_v54 = vmul.f32 0.5, %v181_v23 }
  0xd0   :  { %v183_v28 = vpop.f32.mrf.mxu0 }
  0xd1   :  { %743 = verf.f32 %v259_v26  ;;  %v262_v29 = vmul.f32 0.70710677, %v192_v27  ;;  %v184_v30 = vadd.f32 %v887_v19, %v183_v28  ;;  %v246_v62 = vmul.f32 0.5, %v192_v27 }
  0xd2   :  { %745 = verf.f32 %v261_v24  ;;  %v666_v31 = vpop.f32.mrf.mxu0 }
  0xd3   :  { %747 = verf.f32 %v262_v29  ;;  %v260_v32 = vmul.f32 0.70710677, %v184_v30  ;;  %v894_v33 = vadd.f32 %v666_v31, %v887_v19  ;;  %v244_v1 = vmul.f32 0.5, %v184_v30 }
  0xd4   :  { %v196_v34 = vpop.f32.mrf.mxu0 }
  0xd5   :  { %749 = verf.f32 %v260_v32  ;;  %v265_v35 = vmul.f32 0.70710677, %v894_v33  ;;  %v898_v36 = vadd.f32 %v887_v19, %v196_v34 }
  0xd6   :  { %v667_v37 = vpop.f32.mrf.mxu0 }
  0xd7   :  { %v263_v38 = vmul.f32 0.70710677, %v898_v36  ;;  %v902_v39 = vadd.f32 %v667_v37, %v887_v19  ;;  %751 = verf.f32 %v265_v35  ;;  %v247_v31 = vmul.f32 0.5, %v898_v36 }
  0xd8   :  { %v199_v40 = vpop.f32.mrf.mxu0  ;;  %v249_v35 = vmul.f32 0.5, %v894_v33 }
  0xd9   :  { %v266_v41 = vmul.f32 0.70710677, %v902_v39  ;;  %v906_v42 = vadd.f32 %v887_v19, %v199_v40  ;;  %753 = verf.f32 %v263_v38  ;;  %v250_v29 = vmul.f32 0.5, %v902_v39 }
  0xda   :  { %v670_v43 = vpop.f32.mrf.mxu0 }
  0xdb   :  { %755 = verf.f32 %v266_v41  ;;  %v264_v44 = vmul.f32 0.70710677, %v906_v42  ;;  %v910_v45 = vadd.f32 %v670_v43, %v887_v19  ;;  %v248_v32 = vmul.f32 0.5, %v906_v42 }
  0xdc   :  { %v212_v46 = vpop.f32.mrf.mxu0 }
  0xdd   :  { %757 = verf.f32 %v264_v44  ;;  %v269_v47 = vmul.f32 0.70710677, %v910_v45  ;;  %v914_v49 = vadd.f32 %v887_v19, %v212_v46 }
  0xde   :  { %v744_v48 = vpop.eup %743  ;;  %v671_v50 = vpop.f32.mrf.mxu0 }
  0xdf   :  { %v746_v51 = vpop.eup %745  ;;  %v917_v52 = vadd.f32 %v671_v50, %v887_v19  ;;  %v267_v55 = vmul.f32 0.70710677, %v914_v49  ;;  %v291_v57 = vadd.f32 1.0, %v744_v48  ;;  %759 = verf.f32 %v269_v47 }
  0xe0   :  { %v748_v53 = vpop.eup %747  ;;  %v215_v56 = vpop.f32.mrf.mxu0  ;;  %v293_v61 = vadd.f32 1.0, %v746_v51  ;;  %v251_v33 = vmul.f32 0.5, %v914_v49 }
  0xe1   :  { %v294_v58 = vadd.f32 1.0, %v748_v53  ;;  %v270_v59 = vmul.f32 0.70710677, %v917_v52  ;;  %761 = verf.f32 %v267_v55  ;;  %v216_v63 = vadd.f32 %v887_v19, %v215_v56 }
  0xe2   :  { %v750_v60 = vpop.eup %749  ;;  %v674_v0 = vpop.f32.mrf.mxu0  ;;  %v307_v8 = vmul.f32 %v291_v57, %v243_v54  ;;  %v309_v11 = vmul.f32 %v293_v61, %v245_v4  ;;  %v254_v42 = vmul.f32 0.5, %v917_v52  ;;  %v253_v54 = vmul.f32 0.5, %v910_v45 }
  0xe3   :  { %v292_v2 = vadd.f32 1.0, %v750_v60  ;;  %763 = verf.f32 %v270_v59  ;;  %v923_v3 = vadd.f32 %v674_v0, %v887_v19  ;;  %v310_v5 = vmul.f32 %v294_v58, %v246_v62 }
  0xe4   :  { %v268_v6 = vmul.f32 0.70710677, %v216_v63  ;;  %v228_v7 = vpop.f32.mrf.mxu0  ;;  %v752_v10 = vpop.eup %751  ;;  %v252_v51 = vmul.f32 0.5, %v216_v63 }
  0xe5   :  { %v308_v9 = vmul.f32 %v292_v2, %v244_v1  ;;  %v273_v12 = vmul.f32 0.70710677, %v923_v3  ;;  %v229_v13 = vadd.f32 %v887_v19, %v228_v7  ;;  %v340_v20 = vpack.c.bf16 %v310_v5, %v309_v11 }
  0xe6   :  { %765 = verf.f32 %v268_v6  ;;  %v675_v14 = vpop.f32.mrf.mxu0  ;;  %v754_v15 = vpop.eup %753  ;;  %v297_v28 = vadd.f32 1.0, %v752_v10  ;;  %v257_v45 = vmul.f32 0.5, %v923_v3 }
  0xe7   :  { %v240_v16 = vadd.f32 %v675_v14, %v887_v19  ;;  %v339_v17 = vpack.c.bf16 %v308_v9, %v307_v8  ;;  %v271_v21 = vmul.f32 0.70710677, %v229_v13  ;;  %767 = verf.f32 %v273_v12  ;;  %v325_v14 = vld [vmem:[#allocation2 + $0x10] sm:$0xff] }
  0xe8   :  { %v756_v18 = vpop.eup %755  ;;  %v231_v22 = vpop.f32.mrf.mxu0  ;;  %v295_v27 = vadd.f32 1.0, %v754_v15  ;;  %v313_v43 = vmul.f32 %v297_v28, %v249_v35  ;;  %v255_v52 = vmul.f32 0.5, %v229_v13  ;;  %v327_v28 = vld [vmem:[#allocation2 + $0x20] sm:$0xff] }
  0xe9   :  { %v298_v23 = vadd.f32 1.0, %v756_v18  ;;  %v274_v24 = vmul.f32 0.70710677, %v240_v16  ;;  %v232_v25 = vadd.f32 %v887_v19, %v231_v22  ;;  %692 = vmatprep.mubr.bf16.mxu0 %v339_v17  ;;  %769 = verf.f32 %v271_v21  ;;  %v323_v17 = vld [vmem:[#allocation2] sm:$0xff]  ;;  %v324_v22 = vld [vmem:[#allocation2 + $0x8] sm:$0xff] }
  0xea   :  { %v758_v26 = vpop.eup %757  ;;  %693 = vmatmul.mubr.bf16.vlgmr.msra.gmra.mxu0 %v340_v20  ;;  %v311_v38 = vmul.f32 %v295_v27, %v247_v31  ;;  %v258_v49 = vmul.f32 0.5, %v240_v16  ;;  %v326_v20 = vld [vmem:[#allocation2 + $0x18] sm:$0xff] }
  0xeb   :  { %771 = verf.f32 %v274_v24  ;;  %v272_v30 = vmul.f32 0.70710677, %v232_v25  ;;  %v296_v34 = vadd.f32 1.0, %v758_v26  ;;  %v314_v37 = vmul.f32 %v298_v23, %v250_v29  ;;  %v943_v26 = vld [vmem:[%s1042_s4] ss:$0 sm:$0xff] }
  0xec   :  { %v760_v19 = vpop.eup %759  ;;  %v256_v63 = vmul.f32 0.5, %v232_v25  ;;  %v329_v25 = vld [vmem:[#allocation2 + $0x30] sm:$0xff] }
  0xed   :  { %773 = verf.f32 %v272_v30  ;;  %v312_v40 = vmul.f32 %v296_v34, %v248_v32  ;;  %v342_v39 = vpack.c.bf16 %v314_v37, %v313_v43  ;;  %v301_v36 = vadd.f32 1.0, %v760_v19  ;;  %v330_v34 = vld [vmem:[#allocation2 + $0x38] sm:$0xff] }
  0xee   :  { %v762_v41 = vpop.eup %761 }
  0xef   :  { %v341_v46 = vpack.c.bf16 %v312_v40, %v311_v38  ;;  %v299_v48 = vadd.f32 1.0, %v762_v41  ;;  %v317_v60 = vmul.f32 %v301_v36, %v253_v54  ;;  %v328_v40 = vld [vmem:[#allocation2 + $0x28] sm:$0xff]  ;;  %v334_v54 = vld [vmem:[#allocation2 + $0x58] sm:$0xff] }
  0xf0   :  { %v764_v44 = vpop.eup %763 }
  0xf1   :  { %v302_v47 = vadd.f32 1.0, %v764_v44  ;;  %696 = vmatprep.mubr.bf16.mxu1 %v341_v46  ;;  %v315_v57 = vmul.f32 %v299_v48, %v251_v33 }
  0xf2   :  { %697 = vmatmul.mubr.bf16.vlgmr.msra.gmra.mxu1 %v342_v39 }
  0xf3   :  { %v766_v50 = vpop.eup %765  ;;  %v318_v55 = vmul.f32 %v302_v47, %v254_v42  ;;  %v333_v47 = vld [vmem:[#allocation2 + $0x50] sm:$0xff]  ;;  %v331_v42 = vld [vmem:[#allocation2 + $0x40] sm:$0xff] }
  0xf4   :  { %v300_v53 = vadd.f32 1.0, %v766_v50  ;;  %v768_v56 = vpop.eup %767 }
  0xf5   :  { %v344_v2 = vpack.c.bf16 %v318_v55, %v317_v60  ;;  %v305_v5 = vadd.f32 1.0, %v768_v56 }
  0xf6   :  { %v316_v58 = vmul.f32 %v300_v53, %v252_v51  ;;  %v770_v59 = vpop.eup %769 }
  0xf7   :  { %v303_v0 = vadd.f32 1.0, %v770_v59  ;;  %v321_v10 = vmul.f32 %v305_v5, %v257_v45  ;;  %v332_v59 = vld [vmem:[#allocation2 + $0x48] sm:$0xff] }
  0xf8   :  { %v772_v61 = vpop.eup %771  ;;  %v343_v62 = vpack.c.bf16 %v316_v58, %v315_v57 }
  0xf9   :  { %v306_v1 = vadd.f32 1.0, %v772_v61  ;;  %v319_v7 = vmul.f32 %v303_v0, %v255_v52 }
  0xfa   :  { %v774_v4 = vpop.eup %773  ;;  %700 = vmatprep.mubr.bf16.mxu1 %v343_v62 }
  0xfb   :  { %v304_v6 = vadd.f32 1.0, %v774_v4  ;;  %701 = vmatmul.mubr.bf16.gmra.mxu1 %v344_v2  ;;  %v322_v8 = vmul.f32 %v306_v1, %v258_v49  ;;  %v337_v1 = vld [vmem:[#allocation2 + $0x70] sm:$0xff]  ;;  %v335_v49 = vld [vmem:[#allocation2 + $0x60] sm:$0xff] }
  0xfd   :  { %v320_v9 = vmul.f32 %v304_v6, %v256_v63  ;;  %v346_v12 = vpack.c.bf16 %v322_v8, %v321_v10  ;;  %v338_v8 = vld [vmem:[#allocation2 + $0x78] sm:$0xff] }
  0xff   :  { %v345_v11 = vpack.c.bf16 %v320_v9, %v319_v7 }
 0x101   :  { %704 = vmatprep.mubr.bf16.mxu1 %v345_v11 }
 0x103   :  { %705 = vmatmul.mubr.bf16.gmra.mxu1 %v346_v12 }
 0x1aa   :  { %v694_v15 = vpop.f32.mrf.mxu0 }
 0x1ab   :  { %v510_v13 = vadd.f32 %v694_v15, %v325_v14  ;;  %v336_v14 = vld [vmem:[#allocation2 + $0x68] sm:$0xff] }
 0x1ac   :  { %v445_v18 = vpop.f32.mrf.mxu0 }
 0x1ad   :  { %526 = vst.msk [vmem:[#allocation2 + $0x10] sm:$0xff] %vm25_vm0, %v510_v13  ;;  %v508_v16 = vadd.f32 %v445_v18, %v323_v17 }
 0x1ae   :  { %v695_v21 = vpop.f32.mrf.mxu0 }
 0x1af   :  { %524 = vst.msk [vmem:[#allocation2] sm:$0xff] %vm25_vm0, %v508_v16  ;;  %v511_v3 = vadd.f32 %v695_v21, %v326_v20 }
 0x1b0   :  { %v448_v23 = vpop.f32.mrf.mxu0 }
 0x1b1   :  { %527 = vst.msk [vmem:[#allocation2 + $0x18] sm:$0xff] %vm25_vm0, %v511_v3  ;;  %v509_v24 = vadd.f32 %v448_v23, %v324_v22 }
 0x1b2   :  { %v698_v27 = vpop.f32.mrf.mxu1 }
 0x1b3   :  { %525 = vst.msk [vmem:[#allocation2 + $0x8] sm:$0xff] %vm25_vm0, %v509_v24  ;;  %v514_v30 = vadd.f32 %v698_v27, %v329_v25 }
 0x1b4   :  { %v545_v29 = vld [vmem:[#allocation2 + $0x10] sm:$0xff]  ;;  %v461_v32 = vpop.f32.mrf.mxu1 }
 0x1b5   :  { %v568_v31 = vadd.f32 %v943_v26, %v545_v29  ;;  %530 = vst.msk [vmem:[#allocation2 + $0x30] sm:$0xff] %vm25_vm0, %v514_v30  ;;  %v512_v37 = vadd.f32 %v461_v32, %v327_v28 }
 0x1b6   :  { %v543_v35 = vld [vmem:[#allocation2] sm:$0xff]  ;;  %v699_v38 = vpop.f32.mrf.mxu1 }
 0x1b7   :  { %584 = vst.msk [vmem:[%s1043_s5 + $0x10] sm:$0xff] %vm25_vm0, %v568_v31  ;;  %v566_v19 = vadd.f32 %v943_v26, %v543_v35  ;;  %528 = vst.msk [vmem:[#allocation2 + $0x20] sm:$0xff] %vm25_vm0, %v512_v37  ;;  %v515_v43 = vadd.f32 %v699_v38, %v330_v34 }
 0x1b8   :  { %v546_v41 = vld [vmem:[#allocation2 + $0x18] sm:$0xff]  ;;  %v464_v46 = vpop.f32.mrf.mxu1 }
 0x1b9   :  { %582 = vst.msk [vmem:[%s1043_s5] sm:$0xff] %vm25_vm0, %v566_v19  ;;  %v569_v44 = vadd.f32 %v943_v26, %v546_v41  ;;  %531 = vst.msk [vmem:[#allocation2 + $0x38] sm:$0xff] %vm25_vm0, %v515_v43  ;;  %v513_v48 = vadd.f32 %v464_v46, %v328_v40 }
 0x1ba   :  { %v544_v39 = vld [vmem:[#allocation2 + $0x8] sm:$0xff] }
 0x1bb   :  { %585 = vst.msk [vmem:[%s1043_s5 + $0x18] sm:$0xff] %vm25_vm0, %v569_v44  ;;  %v567_v50 = vadd.f32 %v943_v26, %v544_v39  ;;  %v702_v36 = vpop.f32.mrf.mxu1  ;;  %529 = vst.msk [vmem:[#allocation2 + $0x28] sm:$0xff] %vm25_vm0, %v513_v48 }
 0x1bc   :  { %v518_v33 = vadd.f32 %v702_v36, %v333_v47  ;;  %v549_v51 = vld [vmem:[#allocation2 + $0x30] sm:$0xff] }
 0x1bd   :  { %583 = vst.msk [vmem:[%s1043_s5 + $0x8] sm:$0xff] %vm25_vm0, %v567_v50  ;;  %v477_v53 = vpop.f32.mrf.mxu1  ;;  %v572_v55 = vadd.f32 %v943_v26, %v549_v51 }
 0x1be   :  { %534 = vst.msk [vmem:[#allocation2 + $0x50] sm:$0xff] %vm25_vm0, %v518_v33  ;;  %v516_v56 = vadd.f32 %v477_v53, %v331_v42  ;;  %v547_v57 = vld [vmem:[#allocation2 + $0x20] sm:$0xff] }
 0x1bf   :  { %v703_v58 = vpop.f32.mrf.mxu1  ;;  %588 = vst.msk [vmem:[%s1043_s5 + $0x30] sm:$0xff] %vm25_vm0, %v572_v55  ;;  %v570_v60 = vadd.f32 %v943_v26, %v547_v57 }
 0x1c0   :  { %532 = vst.msk [vmem:[#allocation2 + $0x40] sm:$0xff] %vm25_vm0, %v516_v56  ;;  %v519_v61 = vadd.f32 %v703_v58, %v334_v54  ;;  %v550_v62 = vld [vmem:[#allocation2 + $0x38] sm:$0xff] }
 0x1c1   :  { %v480_v0 = vpop.f32.mrf.mxu1  ;;  %586 = vst.msk [vmem:[%s1043_s5 + $0x20] sm:$0xff] %vm25_vm0, %v570_v60  ;;  %v573_v2 = vadd.f32 %v943_v26, %v550_v62 }
 0x1c2   :  { %535 = vst.msk [vmem:[#allocation2 + $0x58] sm:$0xff] %vm25_vm0, %v519_v61  ;;  %v517_v4 = vadd.f32 %v480_v0, %v332_v59  ;;  %v548_v52 = vld [vmem:[#allocation2 + $0x28] sm:$0xff] }
 0x1c3   :  { %v706_v5 = vpop.f32.mrf.mxu1  ;;  %589 = vst.msk [vmem:[%s1043_s5 + $0x38] sm:$0xff] %vm25_vm0, %v573_v2  ;;  %v571_v63 = vadd.f32 %v943_v26, %v548_v52 }
 0x1c4   :  { %533 = vst.msk [vmem:[#allocation2 + $0x48] sm:$0xff] %vm25_vm0, %v517_v4  ;;  %v522_v6 = vadd.f32 %v706_v5, %v337_v1 }
 0x1c5   :  { %v553_v45 = vld [vmem:[#allocation2 + $0x50] sm:$0xff]  ;;  %v493_v7 = vpop.f32.mrf.mxu1  ;;  %587 = vst.msk [vmem:[%s1043_s5 + $0x28] sm:$0xff] %vm25_vm0, %v571_v63 }
 0x1c6   :  { %v576_v9 = vadd.f32 %v943_v26, %v553_v45  ;;  %538 = vst.msk [vmem:[#allocation2 + $0x70] sm:$0xff] %vm25_vm0, %v522_v6  ;;  %v520_v10 = vadd.f32 %v493_v7, %v335_v49 }
 0x1c7   :  { %v551_v11 = vld [vmem:[#allocation2 + $0x40] sm:$0xff]  ;;  %v707_v12 = vpop.f32.mrf.mxu1 }
 0x1c8   :  { %592 = vst.msk [vmem:[%s1043_s5 + $0x50] sm:$0xff] %vm25_vm0, %v576_v9  ;;  %v574_v15 = vadd.f32 %v943_v26, %v551_v11  ;;  %536 = vst.msk [vmem:[#allocation2 + $0x60] sm:$0xff] %vm25_vm0, %v520_v10  ;;  %v523_v17 = vadd.f32 %v707_v12, %v338_v8 }
 0x1c9   :  { %v554_v13 = vld [vmem:[#allocation2 + $0x58] sm:$0xff]  ;;  %v496_v18 = vpop.f32.mrf.mxu1 }
 0x1ca   :  { %590 = vst.msk [vmem:[%s1043_s5 + $0x40] sm:$0xff] %vm25_vm0, %v574_v15  ;;  %v577_v20 = vadd.f32 %v943_v26, %v554_v13  ;;  %539 = vst.msk [vmem:[#allocation2 + $0x78] sm:$0xff] %vm25_vm0, %v523_v17  ;;  %v521_v16 = vadd.f32 %v496_v18, %v336_v14 }
 0x1cb   :  { %v552_v21 = vld [vmem:[#allocation2 + $0x48] sm:$0xff] }
 0x1cc   :  { %593 = vst.msk [vmem:[%s1043_s5 + $0x58] sm:$0xff] %vm25_vm0, %v577_v20  ;;  %v575_v22 = vadd.f32 %v943_v26, %v552_v21  ;;  %537 = vst.msk [vmem:[#allocation2 + $0x68] sm:$0xff] %vm25_vm0, %v521_v16 }
 0x1cd   :  { %v557_v3 = vld [vmem:[#allocation2 + $0x70] sm:$0xff] }
 0x1ce   :  { %591 = vst.msk [vmem:[%s1043_s5 + $0x48] sm:$0xff] %vm25_vm0, %v575_v22  ;;  %v580_v23 = vadd.f32 %v943_v26, %v557_v3 }
 0x1cf   :  { %v555_v24 = vld [vmem:[#allocation2 + $0x60] sm:$0xff] }
 0x1d0   :  { %596 = vst.msk [vmem:[%s1043_s5 + $0x70] sm:$0xff] %vm25_vm0, %v580_v23  ;;  %v578_v25 = vadd.f32 %v943_v26, %v555_v24 }
 0x1d1   :  { %v558_v27 = vld [vmem:[#allocation2 + $0x78] sm:$0xff] }
 0x1d2   :  { %594 = vst.msk [vmem:[%s1043_s5 + $0x60] sm:$0xff] %vm25_vm0, %v578_v25  ;;  %v581_v28 = vadd.f32 %v943_v26, %v558_v27 }
 0x1d3   :  { %v556_v29 = vld [vmem:[#allocation2 + $0x68] sm:$0xff] }
 0x1d4   :  { %597 = vst.msk [vmem:[%s1043_s5 + $0x78] sm:$0xff] %vm25_vm0, %v581_v28  ;;  %v579_v30 = vadd.f32 %v943_v26, %v556_v29 }
 0x1d6   :  { %595 = vst.msk [vmem:[%s1043_s5 + $0x68] sm:$0xff] %vm25_vm0, %v579_v30 }

</bundles_post_ra>
